<compile_context>
chip_gen: v5e
topology: v5e:2x2
jax: 0.10.0
libtpu: 0.0.40
codegen_flags: <defaults>
</compile_context>

<pallas_src>
import functools
import math

import jax
import jax.numpy as jnp
from jax import lax
from jax.experimental import pallas as pl
from jax.experimental.pallas import tpu as pltpu


# ~2 MiB lane-dense tiles: per-grid-step overhead (~0.35 us) stays <15% of the
# DMA time even at v7x's 3.2 TB/s, while double-buffered in+out tiles remain
# far below any generation's VMEM.
_TARGET_TILE_BYTES = 2 * 1024 * 1024
# Fallback physical-VMEM assumption if the hardware query fails (v7x = 64 MiB
# per TensorCore, the smallest of the supported generations).
_FALLBACK_VMEM_BYTES = 64 * 1024 * 1024


def _eca_kernel_size(channel, b=1, gamma=2):
    kernel_size = int(abs((math.log(channel, 2) + b) / gamma))
    kernel_size = kernel_size if kernel_size % 2 else kernel_size + 1
    return kernel_size


def _tpu_budget_and_cores():
    """Generation-aware scoped-VMEM budget and TensorCore count (defensive)."""
    vmem_cap = _FALLBACK_VMEM_BYTES
    num_cores = 1
    try:
        info = pltpu.get_tpu_info()
        vmem_cap = int(getattr(info, "vmem_capacity_bytes", vmem_cap))
        for attr in ("num_cores", "core_count", "num_tensorcores",
                     "tensorcores_per_chip"):
            val = getattr(info, attr, None)
            if val:
                num_cores = int(val)
                break
    except Exception:
        pass
    if num_cores <= 1:
        try:
            kind = jax.devices()[0].device_kind.lower()
            if ("v7" in kind) or ("v4" in kind) or ("v5p" in kind):
                num_cores = 2
        except Exception:
            pass
    # Leave headroom below physical capacity (~104 MiB budget on v5e/v6e,
    # ~40 MiB on v7x); floor keeps things working if the query fails.
    budget = max(32 << 20, min(vmem_cap - (24 << 20), 112 << 20))
    return budget, num_cores


def _channel_conv_sigmoid(pooled_f32, w_ref, k):
    """pooled_f32: (bt, C) f32. Zero-padded cross-correlation over channels
    (PyTorch Conv1d, bias=False) followed by sigmoid. Returns (bt, C) f32."""
    c = pooled_f32.shape[-1]
    pad = (k - 1) // 2
    padded = jnp.pad(pooled_f32, ((0, 0), (pad, pad)))       # (bt, C + k - 1)
    conv = jnp.zeros_like(pooled_f32)
    for i in range(k):                                       # k is static, tiny
        conv = conv + w_ref[i] * padded[:, i:i + c]
    return jax.nn.sigmoid(conv)


# --------------------------- single-pass fused path ---------------------------

def _eca_fused_kernel(x_ref, w_ref, o_ref, *, k, hw):
    # x_ref: (bt, C, HW) VMEM tile; w_ref: (k,) conv weights in SMEM.
    x = x_ref[...]                                           # native dtype
    # Global average pool over the spatial (lane) axis; f32 accumulation
    # without an explicit full-tile f32 copy.  Mosaic masks the lane padding
    # when HW is not a multiple of 128 (block spans the full array extent).
    pooled = jnp.sum(x, axis=-1, dtype=jnp.float32) * (1.0 / hw)   # (bt, C)
    gate = _channel_conv_sigmoid(pooled, w_ref, k)           # (bt, C) f32
    # Broadcast-multiply in the input dtype (no full-tile f32 up/down cast).
    o_ref[...] = x * gate.astype(x.dtype)[:, :, None]


# ------------------------- two-pass large-shape path --------------------------

def _eca_gate_kernel(x_ref, w_ref, gate_ref, acc_ref, *, k, hw, thw, aligned):
    # grid = (nb, n_hw_tiles); hw axis is the reduction ("arbitrary") axis.
    h = pl.program_id(1)
    nh = pl.num_programs(1)

    @pl.when(h == 0)
    def _():
        acc_ref[...] = jnp.zeros_like(acc_ref)

    x = x_ref[...]                                           # (bt2, C, thw), native dtype
    if not aligned:
        # Mask lanes past HW in the (padded) last spatial tile, in native
        # dtype so no full-tile f32 temporary is created.
        col = lax.broadcasted_iota(jnp.int32, x.shape, 2) + h * thw
        x = jnp.where(col < hw, x, 0)
    acc_ref[...] += jnp.sum(x, axis=-1, dtype=jnp.float32)   # (bt2, C) f32

    @pl.when(h == nh - 1)
    def _():
        pooled = acc_ref[...] * (1.0 / hw)                   # (bt2, C)
        gate = _channel_conv_sigmoid(pooled, w_ref, k)       # (bt2, C) f32
        gate_ref[...] = gate[:, :, None]                     # (bt2, C, 1)


def _eca_scale_kernel(x_ref, gate_ref, o_ref):
    x = x_ref[...]                                           # (bt2, C, thw)
    o_ref[...] = x * gate_ref[...].astype(x.dtype)           # gate: (bt2, C, 1)


# --------------------------------- wrapper ------------------------------------

def _choose_block(count, per_item_tile_bytes, per_item_footprint_bytes,
                  budget, num_cores):
    """Largest block along an independent (batch) axis that keeps the streamed
    tile near the ~2 MiB target, fits the VMEM budget, and on multi-TensorCore
    chips leaves >= 2 grid steps to shard.  No divisor requirement: callers use
    a cdiv grid and padded rows are independent / discarded."""
    cap = max(1, _TARGET_TILE_BYTES // max(1, per_item_tile_bytes))
    cap = min(cap, max(1, (budget - (2 << 20)) // max(1, per_item_footprint_bytes)))
    if num_cores >= 2 and count >= 2:
        cap = min(cap, max(1, count // 2))
    return max(1, min(cap, count))


def eca_block_pallas(x, w, *, force_two_pass=False, two_pass_thw=None):
    """x: (B, C, H, W); w: (k,) squeezed Conv1d(1, 1, k, bias=False) weight."""
    B, C, H, W = x.shape
    HW = H * W
    k = int(w.shape[0])
    itemsize = x.dtype.itemsize
    x3 = x.reshape(B, C, HW)
    w = w.astype(jnp.float32)

    budget, num_cores = _tpu_budget_and_cores()

    # Fused-path per-batch-element footprint: double-buffered input + output
    # tiles.  For sub-32-bit dtypes keep a term for a possible f32 pooling
    # temporary so the path boundary can never compile into a VMEM OOM.
    per_b_tile = C * HW * itemsize
    per_b_footprint = 4 * per_b_tile + (C * HW * 4 if itemsize < 4 else 0)
    fits_single_pass = per_b_footprint + (2 << 20) <= budget

    if fits_single_pass and not force_two_pass:
        bt = _choose_block(B, per_b_tile, per_b_footprint, budget, num_cores)
        nb = pl.cdiv(B, bt)   # partial last block: per-row garbage gates whose
                              # output rows are simply discarded.
        out3 = pl.pallas_call(
            functools.partial(_eca_fused_kernel, k=k, hw=HW),
            out_shape=jax.ShapeDtypeStruct((B, C, HW), x.dtype),
            grid=(nb,),
            in_specs=[
                pl.BlockSpec((bt, C, HW), lambda b: (b, 0, 0)),
                pl.BlockSpec(memory_space=pltpu.MemorySpace.SMEM),
            ],
            out_specs=pl.BlockSpec((bt, C, HW), lambda b: (b, 0, 0)),
            compiler_params=pltpu.CompilerParams(
                dimension_semantics=("parallel",),
                vmem_limit_bytes=budget),
        )(x3, w)
        return out3.reshape(B, C, H, W)

    # -------- two-pass fallback: gate kernel + lane-dense multiply kernel -----
    if two_pass_thw is not None:
        thw = int(two_pass_thw)
    else:
        thw = max(128, (_TARGET_TILE_BYTES // max(1, C * itemsize)) // 128 * 128)
    if thw >= HW:
        thw = HW                      # full (lane-dense) spatial extent
    nh = pl.cdiv(HW, thw)
    aligned = (HW % thw == 0)

    # Block several batch elements per step when C*thw is small.
    per_b2_tile = C * thw * itemsize
    per_b2_footprint = 4 * per_b2_tile + (C * thw * 4 if itemsize < 4 else 0)
    bt2 = _choose_block(B, per_b2_tile, per_b2_footprint, budget, num_cores)
    nb = pl.cdiv(B, bt2)

    gate = pl.pallas_call(
        functools.partial(_eca_gate_kernel, k=k, hw=HW, thw=thw, aligned=aligned),
        out_shape=jax.ShapeDtypeStruct((B, C, 1), jnp.float32),
        grid=(nb, nh),
        in_specs=[
            pl.BlockSpec((bt2, C, thw), lambda b, h: (b, 0, h)),
            pl.BlockSpec(memory_space=pltpu.MemorySpace.SMEM),
        ],
        out_specs=pl.BlockSpec((bt2, C, 1), lambda b, h: (b, 0, 0)),
        scratch_shapes=[pltpu.VMEM((bt2, C), jnp.float32)],
        compiler_params=pltpu.CompilerParams(
            dimension_semantics=("parallel", "arbitrary"),
            vmem_limit_bytes=budget),
    )(x3, w)

    out3 = pl.pallas_call(
        _eca_scale_kernel,
        out_shape=jax.ShapeDtypeStruct((B, C, HW), x.dtype),
        grid=(nb, nh),
        in_specs=[
            pl.BlockSpec((bt2, C, thw), lambda b, h: (b, 0, h)),
            pl.BlockSpec((bt2, C, 1), lambda b, h: (b, 0, 0)),
        ],
        out_specs=pl.BlockSpec((bt2, C, thw), lambda b, h: (b, 0, h)),
        compiler_params=pltpu.CompilerParams(
            dimension_semantics=("parallel", "parallel"),
            vmem_limit_bytes=budget),
    )(x3, gate)
    return out3.reshape(B, C, H, W)


def eca_block_ref(x, w):
    """Pure-JAX reference with identical math."""
    B, C, H, W = x.shape
    k = int(w.shape[0])
    pad = (k - 1) // 2
    pooled = jnp.mean(x.astype(jnp.float32), axis=(2, 3))    # (B, C)
    padded = jnp.pad(pooled, ((0, 0), (pad, pad)))
    conv = sum(w[i] * padded[:, i:i + C] for i in range(k))
    gate = jax.nn.sigmoid(conv)                              # (B, C)
    return (x * gate.astype(x.dtype)[:, :, None, None]).astype(x.dtype)


if __name__ == "__main__":
    # Small shapes consistent with the module. channel=16 -> kernel_size=3.
    B, C, H, W = 2, 16, 16, 16
    k = _eca_kernel_size(C)          # = 3 for C=16

    key = jax.random.PRNGKey(0)
    kx, kw, kx2, kx3 = jax.random.split(key, 4)
    x = jax.random.normal(kx, (B, C, H, W), dtype=jnp.float32)

    # Deterministic Conv1d(1, 1, k, bias=False)-style weight
    # (kaiming-uniform bound = 1/sqrt(fan_in), fan_in = k).
    bound = 1.0 / math.sqrt(k)
    w = jax.random.uniform(kw, (k,), dtype=jnp.float32,
                           minval=-bound, maxval=bound)

    # Path 1: single-pass fused kernel (what real small/medium shapes use).
    ref = eca_block_ref(x, w)
    out = jax.block_until_ready(eca_block_pallas(x, w))
    assert out.shape == x.shape and out.dtype == x.dtype
    assert jnp.allclose(out, ref, atol=1e-5, rtol=1e-5), \
        f"fused path max err {jnp.max(jnp.abs(out - ref))}"

    # Path 1b: odd batch + HW that is not a multiple of 128 (7*7=49) exercises
    # the cdiv batch grid and Mosaic's lane-pad masking of the pooling sum.
    x2 = jax.random.normal(kx2, (3, C, 7, 7), dtype=jnp.float32)
    ref2 = eca_block_ref(x2, w)
    out2 = jax.block_until_ready(eca_block_pallas(x2, w))
    assert jnp.allclose(out2, ref2, atol=1e-5, rtol=1e-5), \
        f"fused odd-shape max err {jnp.max(jnp.abs(out2 - ref2))}"

    # Path 2: force the two-pass fallback (thw=128 -> 2 aligned HW tiles).
    out3 = jax.block_until_ready(
        eca_block_pallas(x, w, force_two_pass=True, two_pass_thw=128))
    assert out3.shape == x.shape and out3.dtype == x.dtype
    assert jnp.allclose(out3, ref, atol=1e-5, rtol=1e-5), \
        f"two-pass path max err {jnp.max(jnp.abs(out3 - ref))}"

    # Path 2b: two-pass with an unaligned last spatial tile (HW=144, thw=128)
    # to exercise the in-kernel lane mask.
    x3 = jax.random.normal(kx3, (2, C, 12, 12), dtype=jnp.float32)
    ref3 = eca_block_ref(x3, w)
    out4 = jax.block_until_ready(
        eca_block_pallas(x3, w, force_two_pass=True, two_pass_thw=128))
    assert jnp.allclose(out4, ref3, atol=1e-5, rtol=1e-5), \
        f"two-pass unaligned max err {jnp.max(jnp.abs(out4 - ref3))}"

    print("KERNEL_OK")
</pallas_src>

<mosaic_0001>
module attributes {stable_mosaic.version = 11 : i64} {
  func.func @_eca_fused_kernel(%arg0: i32, %arg1: memref<2x16x256xf32, #tpu.memory_space<vmem>>, %arg2: memref<3xf32, #tpu.memory_space<smem>>, %arg3: memref<2x16x256xf32, #tpu.memory_space<vmem>>) attributes {dimension_semantics = [#tpu.dimension_semantics<parallel>], iteration_bounds = array<i64: 1>, scalar_prefetch = 0 : i64, scratch_operands = 0 : i64, tpu.core_type = #tpu.core_type<tc>, window_params = [{transform_indices = @transform_0, window_bounds = array<i64: 2, 16, 256>}, {transform_indices = @transform_1, window_bounds = array<i64: 3>}, {transform_indices = @transform_2, window_bounds = array<i64: 2, 16, 256>}]} {
    %c0 = arith.constant 0 : index
    %c0_0 = arith.constant 0 : index
    %c0_1 = arith.constant 0 : index
    %0 = vector.load %arg1[%c0, %c0_0, %c0_1] : memref<2x16x256xf32, #tpu.memory_space<vmem>>, vector<2x16x256xf32>
    %cst = arith.constant dense<0.000000e+00> : vector<2x16xf32>
    %1 = vector.multi_reduction <add>, %0, %cst [2] : vector<2x16x256xf32> to vector<2x16xf32>
    %cst_2 = arith.constant 3.906250e-03 : f32
    %2 = vector.broadcast %cst_2 : f32 to vector<2x16xf32>
    %3 = arith.mulf %1, %2 : vector<2x16xf32>
    %c0_i32 = arith.constant 0 : i32
    %4 = arith.sitofp %c0_i32 : i32 to f32
    %5 = vector.broadcast %4 : f32 to vector<2x1xf32>
    %6 = tpu.concatenate %5, %3 in 1 : vector<2x1xf32>, vector<2x16xf32> -> vector<2x17xf32>
    %7 = vector.broadcast %4 : f32 to vector<2x1xf32>
    %8 = tpu.concatenate %6, %7 in 1 : vector<2x17xf32>, vector<2x1xf32> -> vector<2x18xf32>
    %cst_3 = arith.constant 0.000000e+00 : f32
    %9 = vector.broadcast %cst_3 : f32 to vector<2x16xf32>
    %c0_4 = arith.constant 0 : index
    %10 = memref.load %arg2[%c0_4] : memref<3xf32, #tpu.memory_space<smem>>
    %11 = vector.extract_strided_slice %8 {offsets = [0, 0], sizes = [2, 16], strides = [1, 1]} : vector<2x18xf32> to vector<2x16xf32>
    %12 = vector.broadcast %10 : f32 to vector<2x16xf32>
    %13 = arith.mulf %12, %11 : vector<2x16xf32>
    %14 = arith.addf %9, %13 : vector<2x16xf32>
    %c1 = arith.constant 1 : index
    %15 = memref.load %arg2[%c1] : memref<3xf32, #tpu.memory_space<smem>>
    %16 = vector.extract_strided_slice %8 {offsets = [0, 1], sizes = [2, 16], strides = [1, 1]} : vector<2x18xf32> to vector<2x16xf32>
    %17 = vector.broadcast %15 : f32 to vector<2x16xf32>
    %18 = arith.mulf %17, %16 : vector<2x16xf32>
    %19 = arith.addf %14, %18 : vector<2x16xf32>
    %c2 = arith.constant 2 : index
    %20 = memref.load %arg2[%c2] : memref<3xf32, #tpu.memory_space<smem>>
    %21 = vector.extract_strided_slice %8 {offsets = [0, 2], sizes = [2, 16], strides = [1, 1]} : vector<2x18xf32> to vector<2x16xf32>
    %22 = vector.broadcast %20 : f32 to vector<2x16xf32>
    %23 = arith.mulf %22, %21 : vector<2x16xf32>
    %24 = arith.addf %19, %23 : vector<2x16xf32>
    %25 = arith.negf %24 : vector<2x16xf32>
    %26 = math.exp %25 : vector<2x16xf32>
    %cst_5 = arith.constant 1.000000e+00 : f32
    %27 = vector.broadcast %cst_5 : f32 to vector<2x16xf32>
    %28 = arith.addf %27, %26 : vector<2x16xf32>
    %29 = arith.divf %27, %28 : vector<2x16xf32>
    %30 = vector.shape_cast %29 : vector<2x16xf32> to vector<2x16x1xf32>
    %31 = vector.broadcast %30 : vector<2x16x1xf32> to vector<2x16x256xf32>
    %32 = arith.mulf %0, %31 : vector<2x16x256xf32>
    %c0_6 = arith.constant 0 : index
    %c0_7 = arith.constant 0 : index
    %c0_8 = arith.constant 0 : index
    %33 = vector.load %arg3[%c0_6, %c0_7, %c0_8] : memref<2x16x256xf32, #tpu.memory_space<vmem>>, vector<2x16x256xf32>
    tpu.vector_store %arg3[%c0_6, %c0_7, %c0_8], %32 {strides = array<i32>} : memref<2x16x256xf32, #tpu.memory_space<vmem>>, vector<2x16x256xf32>,
    return
  }
  func.func @transform_0(%arg0: i32) -> (i32, i32, i32) {
    %c0_i32 = arith.constant 0 : i32
    %c0_i32_0 = arith.constant 0 : i32
    %c0_i32_1 = arith.constant 0 : i32
    return %arg0, %c0_i32, %c0_i32_0 : i32, i32, i32
  }
  func.func @transform_1(%arg0: i32) -> i32 {
    %c0_i32 = arith.constant 0 : i32
    %c0_i32_0 = arith.constant 0 : i32
    return %c0_i32 : i32
  }
  func.func @transform_2(%arg0: i32) -> (i32, i32, i32) {
    %c0_i32 = arith.constant 0 : i32
    %c0_i32_0 = arith.constant 0 : i32
    %c0_i32_1 = arith.constant 0 : i32
    return %arg0, %c0_i32, %c0_i32_0 : i32, i32, i32
  }
}

</mosaic_0001>

<bundles_post_ra>
// kernel: tpu_custom_call.1
= control target key start
LH: loop header
LB: loop body
LE: loop exit
PB: predicated region body
PF: predicated region fallthrough
CT: control target
= control target key end

     0   :  { %7 = vsyncpa [#allocation3], 0  ;;  %s342_s0 = inlined_call_operand.hbm [shape: f32[2,16,256], index: 0, kind: input, shape index: {}]   ;;  %s343_s1 = inlined_call_operand.hbm [shape: f32[3], index: 1, kind: input, shape index: {}]   ;;  %s344_s2 = inlined_call_operand.hbm [shape: f32[2,16,256], index: 2, kind: output, shape index: {}]  }
   0x1   :  { %8 = vsyncpa [#allocation5], 0 }
   0x2   :  { %9 = vsyncpa [#allocation4], 0  ;;  %s14_s11 = sshll.u32 %s342_s0, 4  ;;  %s273_s12 = smov [#allocation2]   ;;  %s15_s11 = int_to_ptr.hbm [resolvable:$true] %s14_s11 }
   0x3   :  { %s16_s13 = sshll.u32 %s273_s12, 4  ;;  %s28_s16 = sshll.u32 %s343_s1, 4  ;;  %s17_s13 = int_to_ptr.vmem [resolvable:$true] %s16_s13  ;;  %s29_s16 = int_to_ptr.hbm [resolvable:$true] %s28_s16 }
   0x4   :  { %s274_s17 = smov 256   ;;  %s275_s18 = smov 16  }
   0x5   :  { %22 = dma.hbm_to_vmem [thread:$0]  %s15_s11, 1024, %s17_s13, [#allocation3], %s274_s17, %s274_s17, %s275_s18  }
   0x6   :  { %s276_s19 = smov [#allocation6]  }
   0x7   :  { %31 = dma.hbm_to_smem %s29_s16, 16, %s276_s19, [#allocation5]  }
   0x8   :  { %267 = dma.done.wait [#allocation3], 1024  }
   0x9   :  { %268 = vsyncadd [#allocation3], 4294966272 }
   0xa   :  { %269 = dma.done.wait [#allocation5], 16  }
   0xb   :  { %270 = vsyncadd [#allocation5], 4294967280 }
   0xc   :  { %40 = sfence }
   0xd   :  { %v304_v0 = vld [vmem:[#allocation2 + $0x20] sm:$0xff]  ;;  %v306_v1 = vld [vmem:[#allocation2 + $0x28] sm:$0xff]  ;;  %v316_v6 = vld [vmem:[#allocation2 + $0x30] sm:$0xff]  ;;  %v69_v12 = vlaneseq  ;;  %s188_s0 = sld [smem:[#allocation6 + $0x1]]  ;;  %vm75_vm0 = vcmask 138312   ;;  %vm80_vm1 = vcmask 1041409  }
   0xe   :  { %v308_v2 = vld [vmem:[#allocation2] sm:$0xff]  ;;  %v55_v3 = vadd.f32 %v306_v1, %v304_v0  ;;  %v312_v4 = vld [vmem:[#allocation2 + $0x8] sm:$0xff]  ;;  %v318_v7 = vld [vmem:[#allocation2 + $0x38] sm:$0xff]  ;;  %vm83_vm2 = vcmask 7168   ;;  %vm85_vm3 = vcmask 138240   ;;  %s189_s1 = sld [smem:[#allocation6 + $0x2]] }
   0xf   :  { %v49_v5 = vadd.f32 %v312_v4, %v308_v2  ;;  %v320_v8 = vld [vmem:[#allocation2 + $0x10] sm:$0xff]  ;;  %v322_v9 = vld [vmem:[#allocation2 + $0x18] sm:$0xff]  ;;  %v58_v10 = vadd.f32 %v318_v7, %v316_v6  ;;  %v70_v15 = vand.u32 127, %v69_v12  ;;  %s277_s20 = smov 127   ;;  %s278_s21 = smov 126   ;;  %v128_v37 = vshrl.u32 %v69_v12, 7 }
  0x10   :  { %56 = vadd.xlane.f32.xlu1 %v55_v3  ;;  %v52_v11 = vadd.f32 %v322_v9, %v320_v8  ;;  %s87_s22 = sld [smem:[#allocation6]]  ;;  %s279_s23 = smov [#allocation7]  }
  0x11   :  { %50 = vadd.xlane.f32.xlu0 %v49_v5  ;;  %v71_v16 = vadd.s32 4294967295, %v70_v15  ;;  %v73_v18 = vadd.s32 4294967287, %v70_v15  ;;  %200 = vset.pattern.permute.xlu2 %v128_v37  ;;  %v135_v38 = vadd.s32 8, %v128_v37  ;;  %s172_s24 = sshll.u32 %s279_s23, 4  ;;  %s174_s27 = sshll.u32 %s344_s2, 4  ;;  %s173_s24 = int_to_ptr.vmem [resolvable:$true] %s172_s24  ;;  %s175_s27 = int_to_ptr.hbm [resolvable:$true] %s174_s27 }
  0x12   :  { %198 = vset.pattern.permute.xlu0 %v128_v37 }
  0x13   :  { %v92_v31 = vstv %s188_s0  ;;  %199 = vset.pattern.permute.xlu1 %v135_v38 }
  0x14   :  { %v100_v35 = vstv %s189_s1 }
  0x16   :  { %v88_v40 = vstv %s87_s22 }
  0x18   :  { %59 = vadd.xlane.f32.xlu1 %v58_v10 }
  0x19   :  { %53 = vadd.xlane.f32.xlu0 %v52_v11 }
  0x83   :  { %v57_v13 = vpop.xlane.xlu1 %56 }
  0x84   :  { %v51_v14 = vpop.xlane.xlu0 %50  ;;  %v63_v17 = vmul.f32 0.00390625, %v57_v13 }
  0x85   :  { %v61_v19 = vmul.f32 0.00390625, %v51_v14 }
  0x86   :  { %v77_v24 = vperm.slane %v63_v17, %v71_v16 }
  0x87   :  { %v72_v26 = vperm.slane %v61_v19, %v71_v16 }
  0x8b   :  { %v60_v20 = vpop.xlane.xlu1 %59 }
  0x8c   :  { %v64_v21 = vmul.f32 0.00390625, %v60_v20  ;;  %v54_v22 = vpop.xlane.xlu0 %53 }
  0x8d   :  { %v62_v23 = vmul.f32 0.00390625, %v54_v22 }
  0x8e   :  { %v78_v25 = vperm.slane %v64_v21, %v73_v18 }
  0x8f   :  { %v74_v27 = vperm.slane %v62_v23, %v73_v18 }
  0x90   :  { %v79_v28 = vsel %vm75_vm0, %v78_v25, %v77_v24 }
  0x91   :  { %v76_v29 = vsel %vm75_vm0, %v74_v27, %v72_v26 }
  0x92   :  { %v81_v30 = vsel %vm80_vm1, %v79_v28, %v76_v29 }
  0x93   :  { %v84_v32 = vsel %vm83_vm2, 0.0, %v81_v30 }
  0x94   :  { %v86_v33 = vsel %vm85_vm3, %v84_v32, 0.0 }
  0x95   :  { %v93_v34 = vmul.f32 %v92_v31, %v86_v33  ;;  %v101_v36 = vmul.f32 %v100_v35, %v86_v33  ;;  %v89_v41 = vmul.f32 %v88_v40, %v86_v33 }
  0x97   :  { %95 = vrot.lane.b32.xlu2 %v93_v34, %s277_s20 }
  0x9f   :  { %103 = vrot.lane.b32.xlu2 %v101_v36, %s278_s21 }
  0xf1   :  { %v96_v39 = vpop.permute.xlu2 %95 }
  0xf2   :  { %v98_v42 = vadd.f32 %v96_v39, %v89_v41 }
  0xf9   :  { %v104_v43 = vpop.permute.xlu2 %103 }
  0xfa   :  { %v106_v44 = vadd.f32 %v104_v43, %v98_v42 }
  0xfc   :  { %v190_v45 = vmul.f32 -1.442695, %v106_v44 }
  0xfe   :  { %203 = vpow2.f32 %v190_v45 }
 0x104   :  { %v204_v46 = vpop.eup %203 }
 0x105   :  { %v110_v47 = vadd.f32 1.0, %v204_v46 }
 0x107   :  { %205 = vrcp.f32 %v110_v47  ;;  %v122_v51 = vand.u32 2147483648, %v110_v47  ;;  %v120_v53 = vand.u32 2147483647, %v110_v47  ;;  %vm116_vm5 = vweird.f32 %v110_v47 }
 0x109   :  { %v123_v55 = vor.u32 1.1754944e-38, %v122_v51  ;;  %vm121_vm7 = vcmp.eq.f32.partialorder %v120_v53, 8.507059e+37 }
 0x10d   :  { %v206_v48 = vpop.eup %205 }
 0x10e   :  { %v112_v49 = vmul.f32 %v206_v48, %v110_v47  ;;  %vm117_vm4 = vweird.f32 %v206_v48 }
 0x10f   :  { %vm118_vm6 = vmor %vm116_vm5, %vm117_vm4 }
 0x110   :  { %v113_v50 = vsub.f32 1.0, %v112_v49 }
 0x112   :  { %v114_v52 = vmul.f32 %v206_v48, %v113_v50 }
 0x114   :  { %v115_v54 = vadd.f32 %v206_v48, %v114_v52 }
 0x116   :  { %v119_v56 = vsel %vm118_vm6, %v206_v48, %v115_v54 }
 0x117   :  { %v124_v57 = vsel %vm121_vm7, %v123_v55, %v119_v56 }
 0x118   :  { %v139_v58 = vperm.slane %v124_v57, 1  ;;  %v126_v59 = vperm.slane %v124_v57, 0 }
 0x11a   :  { %144 = vperm.xlu2 %200, %v139_v58   ;;  %137 = vperm.xlu1 %199, %v126_v59  }
 0x11b   :  { %131 = vperm.xlu0 %198, %v126_v59  }
 0x122   :  { %201 = vset.pattern.permute.xlu2 %v135_v38 }
 0x123   :  { %202 = vset.pattern.permute.xlu0 %v135_v38 }
 0x12a   :  { %150 = vperm.xlu2 %201, %v139_v58  }
 0x174   :  { %v145_v60 = vpop.permute.xlu2 %144 }
 0x175   :  { %v156_v61 = vmul.f32 %v145_v60, %v304_v0  ;;  %v157_v62 = vmul.f32 %v145_v60, %v306_v1 }
 0x177   :  { %164 = vst [vmem:[#allocation7 + $0x20] sm:$0xff] %v156_v61 }
 0x178   :  { %165 = vst [vmem:[#allocation7 + $0x28] sm:$0xff] %v157_v62 }
 0x184   :  { %v151_v63 = vpop.permute.xlu2 %150 }
 0x185   :  { %v158_v3 = vmul.f32 %v151_v63, %v316_v6  ;;  %v159_v5 = vmul.f32 %v151_v63, %v318_v7 }
 0x187   :  { %166 = vst [vmem:[#allocation7 + $0x30] sm:$0xff] %v158_v3 }
 0x188   :  { %167 = vst [vmem:[#allocation7 + $0x38] sm:$0xff] %v159_v5 }
 0x18c   :  { %v138_v10 = vpop.permute.xlu1 %137 }
 0x18d   :  { %v154_v11 = vmul.f32 %v138_v10, %v320_v8  ;;  %v155_v12 = vmul.f32 %v138_v10, %v322_v9  ;;  %v132_v13 = vpop.permute.xlu0 %131 }
 0x18e   :  { %v152_v0 = vmul.f32 %v132_v13, %v308_v2  ;;  %v153_v1 = vmul.f32 %v132_v13, %v312_v4 }
 0x18f   :  { %162 = vst [vmem:[#allocation7 + $0x10] sm:$0xff] %v154_v11 }
 0x190   :  { %163 = vst [vmem:[#allocation7 + $0x18] sm:$0xff] %v155_v12 }
 0x191   :  { %160 = vst [vmem:[#allocation7] sm:$0xff] %v152_v0 }
 0x192   :  { %161 = vst [vmem:[#allocation7 + $0x8] sm:$0xff] %v153_v1 }
 0x193   :  { %180 = dma.vmem_to_hbm [thread:$0]  %s173_s24, 1024, %s175_s27, [#allocation4], %s274_s17, %s274_s17, %s275_s18  }
 0x194   :  { %271 = dma.done.wait [#allocation4], 1024  }
 0x195   :  { %272 = vsyncadd [#allocation4], 4294966272 }
 0x196   :  { %185 = vsyncpa [#allocation3], 1 }
 0x197   :  { %186 = vsyncpa [#allocation4], 1 }
 0x198   :  { %187 = vsyncpa [#allocation5], 1 }

</bundles_post_ra>
